<compile_context>
chip_gen: v7x
topology: tpu7x:2x2x1
jax: 0.10.0
libtpu: 0.0.40
codegen_flags: <defaults>
</compile_context>

<pallas_src>
import jax
import jax.numpy as jnp
from jax.experimental import pallas as pl
from jax.experimental.pallas import tpu as pltpu


def lin_kernel(wb_ref, x_ref, o_ref):
    # Degenerate Linear(1, 1): y = x * w + b, one VPU FMA per element.
    # wb_ref is a 1-D SMEM f32[2] = [weight, bias].
    o_ref[...] = x_ref[...] * wb_ref[0] + wb_ref[1]


def _device_defaults():
    """Per-generation (block_rows, vmem_limit_bytes) for the streaming kernel."""
    try:
        kind = jax.devices()[0].device_kind.lower()
    except Exception:
        kind = ""
    if "v5e" in kind or "v5 lite" in kind or "v5litepod" in kind:
        # v5e (~820 GB/s): 2 MiB tiles already amortize the ~0.35 us/step
        # overhead; keep the explicit limit since default scoped VMEM is 16 MiB.
        return 512, 32 * 1024 * 1024
    if "v7" in kind or "tpu7" in kind:
        # v7x (~3.2 TB/s per TC, 64 MiB VMEM): 8 MiB tiles keep the per-step
        # overhead <5%; 2x(in+out) double buffers = 32 MiB < 48 MiB cap.
        return 2048, 48 * 1024 * 1024
    # v6e and other defaults: 4 MiB tiles (~16 MiB double-buffered working set).
    return 1024, 32 * 1024 * 1024


def _pick_lanes(n, max_lanes):
    lanes = max_lanes
    while lanes >= 128:
        if n % lanes == 0:
            return lanes
        lanes //= 2
    return None


def _round_up(x, m):
    return ((x + m - 1) // m) * m


def _pallas_affine_2d(x2d, wb, block_rows, vmem_limit):
    rows, lanes = x2d.shape
    grid = (pl.cdiv(rows, block_rows),)
    tile_spec = pl.BlockSpec((block_rows, lanes), lambda i: (i, 0))
    return pl.pallas_call(
        lin_kernel,
        out_shape=jax.ShapeDtypeStruct((rows, lanes), x2d.dtype),
        grid=grid,
        in_specs=[
            pl.BlockSpec(memory_space=pltpu.MemorySpace.SMEM),  # [w, b] scalars
            tile_spec,                                          # x tile (VMEM)
        ],
        out_specs=tile_spec,
        compiler_params=pltpu.CompilerParams(
            dimension_semantics=("parallel",),   # megacore / v7x 2-TC sharding
            vmem_limit_bytes=vmem_limit,
        ),
    )(wb, x2d)


def lin_forward(x, w, b, *, block_rows=None, max_lanes=1024, min_grid_steps=4):
    """Forward of nn.Linear(1, 1): y = x @ W.T + b over the trailing dim of 1.

    x: (..., 1) f32, w: (1, 1) f32, b: (1,) f32  ->  (..., 1) f32
    """
    orig_shape = x.shape
    n = x.size
    default_rows, vmem_limit = _device_defaults()
    if block_rows is None:
        block_rows = default_rows

    # Pack W (1,1) and b (1,) into one 1-D SMEM scalar pair.
    wb = jnp.concatenate([w.reshape(-1), b.reshape(-1)]).astype(x.dtype)

    lanes = _pick_lanes(n, max_lanes)

    if lanes is not None:
        # Zero-copy path: flatten to a lane-dense (rows, lanes) slab.  Both
        # reshapes are free bitcasts (no pad, no post-slice); ragged row counts
        # are handled by Pallas' masked edge blocks via a cdiv grid.
        rows = n // lanes
        br = min(block_rows, _round_up(rows, 8))
        # Keep enough grid steps for cross-core sharding / DMA pipelining.
        while br > 8 and pl.cdiv(rows, br) < min_grid_steps:
            br //= 2
        out2d = _pallas_affine_2d(x.reshape(rows, lanes), wb, br, vmem_limit)
        return out2d.reshape(orig_shape)

    if n <= 128 * 1024:
        # Small irregular input: single full-array block (1, n).  Block dims
        # equal to the array dims are always legal and the tile fits VMEM.
        out2d = _pallas_affine_2d(x.reshape(1, n), wb, 1, vmem_limit)
        return out2d.reshape(orig_shape)

    # TODO(synk): large inputs whose element count is not a multiple of 128
    # have no zero-copy lane-dense Pallas tiling; the fused XLA affine below is
    # already HBM-roofline-optimal (1 read + 1 write), so we use it rather than
    # re-introducing a pad + post-slice around the kernel.
    return x * wb[0] + wb[1]


if __name__ == "__main__":
    key = jax.random.PRNGKey(0)
    kx1, kw, kb, kx2, kx3 = jax.random.split(key, 5)

    # PyTorch-style init for Linear(1,1): U(-1/sqrt(fan_in), 1/sqrt(fan_in)), fan_in=1.
    w = jax.random.uniform(kw, (1, 1), dtype=jnp.float32, minval=-1.0, maxval=1.0)
    b = jax.random.uniform(kb, (1,), dtype=jnp.float32, minval=-1.0, maxval=1.0)

    def ref_fn(x):
        return x * w[0, 0] + b[0]

    # 1) Tiny shape implied by the module (batch=2, seq=8, features=1):
    #    exercises the single-block (1, n) path.
    x1 = jax.random.normal(kx1, (2, 8, 1), dtype=jnp.float32)
    o1 = jax.block_until_ready(lin_forward(x1, w, b))
    assert o1.shape == x1.shape
    assert jnp.allclose(o1, ref_fn(x1), atol=1e-6, rtol=1e-6)

    # 2) Lane-divisible shape: exercises the zero-copy tiled streaming path
    #    (lanes=1024, multi-step grid, no pad / no post-slice anywhere).
    x2 = jax.random.normal(kx2, (4, 32768, 1), dtype=jnp.float32)
    o2 = jax.block_until_ready(lin_forward(x2, w, b))
    assert o2.shape == x2.shape
    assert jnp.allclose(o2, ref_fn(x2), atol=1e-6, rtol=1e-6)

    # 3) Divisible by 128 but ragged in rows (rows=15, block_rows=8):
    #    exercises Pallas' masked edge block instead of padding.
    x3 = jax.random.normal(kx3, (3, 640, 1), dtype=jnp.float32)
    o3 = jax.block_until_ready(lin_forward(x3, w, b))
    assert o3.shape == x3.shape
    assert jnp.allclose(o3, ref_fn(x3), atol=1e-6, rtol=1e-6)

    print("KERNEL_OK")
</pallas_src>

<mosaic_0001>
module attributes {stable_mosaic.version = 11 : i64} {
  func.func @lin_kernel(%arg0: i32, %arg1: memref<2xf32, #tpu.memory_space<smem>>, %arg2: memref<1x16xf32, #tpu.memory_space<vmem>>, %arg3: memref<1x16xf32, #tpu.memory_space<vmem>>) attributes {dimension_semantics = [#tpu.dimension_semantics<parallel>], iteration_bounds = array<i64: 1>, scalar_prefetch = 0 : i64, scratch_operands = 0 : i64, tpu.core_type = #tpu.core_type<tc>, window_params = [{transform_indices = @transform_0, window_bounds = array<i64: 2>}, {transform_indices = @transform_1, window_bounds = array<i64: 1, 16>}, {transform_indices = @transform_2, window_bounds = array<i64: 1, 16>}]} {
    %c0 = arith.constant 0 : index
    %c0_0 = arith.constant 0 : index
    %0 = vector.load %arg2[%c0, %c0_0] : memref<1x16xf32, #tpu.memory_space<vmem>>, vector<1x16xf32>
    %c0_1 = arith.constant 0 : index
    %1 = memref.load %arg1[%c0_1] : memref<2xf32, #tpu.memory_space<smem>>
    %2 = vector.broadcast %1 : f32 to vector<1x16xf32>
    %3 = arith.mulf %0, %2 : vector<1x16xf32>
    %c1 = arith.constant 1 : index
    %4 = memref.load %arg1[%c1] : memref<2xf32, #tpu.memory_space<smem>>
    %5 = vector.broadcast %4 : f32 to vector<1x16xf32>
    %6 = arith.addf %3, %5 : vector<1x16xf32>
    %c0_2 = arith.constant 0 : index
    %c0_3 = arith.constant 0 : index
    %7 = vector.load %arg3[%c0_2, %c0_3] : memref<1x16xf32, #tpu.memory_space<vmem>>, vector<1x16xf32>
    tpu.vector_store %arg3[%c0_2, %c0_3], %6 {strides = array<i32>} : memref<1x16xf32, #tpu.memory_space<vmem>>, vector<1x16xf32>,
    return
  }
  func.func @transform_0(%arg0: i32) -> i32 {
    %c0_i32 = arith.constant 0 : i32
    %c0_i32_0 = arith.constant 0 : i32
    return %c0_i32 : i32
  }
  func.func @transform_1(%arg0: i32) -> (i32, i32) {
    %c0_i32 = arith.constant 0 : i32
    %c0_i32_0 = arith.constant 0 : i32
    return %arg0, %c0_i32 : i32, i32
  }
  func.func @transform_2(%arg0: i32) -> (i32, i32) {
    %c0_i32 = arith.constant 0 : i32
    %c0_i32_0 = arith.constant 0 : i32
    return %arg0, %c0_i32 : i32, i32
  }
}

</mosaic_0001>

<bundles_post_ra>
// kernel: tpu_custom_call.1
= control target key start
LH: loop header
LB: loop body
LE: loop exit
PB: predicated region body
PF: predicated region fallthrough
CT: control target
= control target key end

     0   :  { %7 = vsyncpa [#allocation4], 0  ;;  %s130_s0 = inlined_call_operand.hbm [shape: f32[2], index: 0, kind: input, shape index: {}]   ;;  %s131_s1 = inlined_call_operand.vmem [shape: f32[1,16], index: 1, kind: input, shape index: {}]   ;;  %s132_s2 = inlined_call_operand.hbm [shape: f32[1,16], index: 2, kind: output, shape index: {}]  }
   0x1   :  { %8 = vsyncpa [#allocation3], 0  ;;  %s50_s11 = scalar_lea.hbm %s130_s0, 16 }
   0x2   :  { %p51_p0 = scmp.ne.s32.totalorder %s130_s0, %s50_s11  ;;  %p54_p1 = scmp.lt.u32.totalorder %s50_s11, %s130_s0 }
   0x4   :  { %p56_p2 = pnand %p54_p1, %p51_p0 }
   0x6   :  { %59 = shalt.err (!%p56_p2)
}
   0x7   :  { %s86_s16 = smov [#allocation2]  }
   0x8   :  { %16 = dma.hbm_to_smem %s130_s0, 16, %s86_s16, [#allocation4]  }
   0x9   :  { %82 = dma.done.wait [#allocation4], 16  }
   0xa   :  { %83 = vsyncadd [#allocation4], 4294967280 }
   0xb   :  { %22 = sfence }
   0xc   :  { %s24_s19 = sld [smem:[#allocation2]]  ;;  %s47_s20 = sld [smem:[#allocation2 + $0x1]]  ;;  %v23_v0 = vld [vmem:[%s131_s1] sm:$0x1]  ;;  %vm30_vm0 = vcmask 122880  }
   0xd   :  { %s87_s23 = smov [#allocation5]  }
   0xe   :  { %s38_s24 = sshll.u32 %s87_s23, 4  ;;  %s39_s24 = int_to_ptr.vmem [resolvable:$true] %s38_s24 }
   0xf   :  { %s60_s25 = scalar_lea.vmem %s39_s24, 16  ;;  %s64_s0 = scalar_lea.vmem %s39_s24, 32 }
  0x10   :  { %p61_p3 = scmp.ne.s32.totalorder %s39_s24, %s60_s25  ;;  %p65_p4 = scmp.lt.s32.totalorder %s39_s24, %s39_s24 }
  0x11   :  { %p66_p5 = scmp.lt.s32.totalorder %s64_s0, %s60_s25 }
  0x12   :  { %v25_v1 = vstv %s24_s19  ;;  %v28_v2 = vstv %s47_s20 }
  0x13   :  { %v26_v3 = vmul.f32 %v25_v1, %v23_v0  ;;  %p67_p6 = por %p66_p5, %p65_p4 }
  0x15   :  { %v29_v4 = vadd.f32 %v28_v2, %v26_v3  ;;  %p68_p7 = pnand %p67_p6, %p61_p3 }
  0x17   :  { %31 = vst.msk [vmem:[#allocation5] sm:$0x1] %vm30_vm0, %v29_v4 }
  0x18   :  { %71 = shalt.err (!%p68_p7)
}
  0x19   :  { %s72_s1 = scalar_lea.hbm %s132_s2, 16 }
  0x1a   :  { %p73_p8 = scmp.ne.s32.totalorder %s132_s2, %s72_s1  ;;  %p76_p9 = scmp.lt.u32.totalorder %s72_s1, %s132_s2 }
  0x1c   :  { %p78_p10 = pnand %p76_p9, %p73_p8 }
  0x1e   :  { %81 = shalt.err (!%p78_p10)
}
  0x1f   :  { %41 = dma.vmem_to_hbm [thread:$0]  %s39_s24, 16, %s132_s2, [#allocation3]  }
  0x20   :  { %84 = dma.done.wait [#allocation3], 16  }
  0x21   :  { %85 = vsyncadd [#allocation3], 4294967280 }
  0x22   :  { %45 = vsyncpa [#allocation3], 1 }
  0x23   :  { %46 = vsyncpa [#allocation4], 1 }

</bundles_post_ra>
